<compile_context>
chip_gen: v5e
topology: v5e:2x2
jax: 0.10.0
libtpu: 0.0.40
codegen_flags: <defaults>
</compile_context>

<pallas_src>
import jax
import jax.numpy as jnp
from jax.experimental import pallas as pl
from jax.experimental.pallas import tpu as pltpu

HIDDEN = 256          # per-head hidden width
_W = 2 * HIDDEN       # fused twin-head width (512)
_BATCH_TILE = 128     # batch tile, only used for training-sized batches


def _pad16(n: int) -> int:
    return ((n + 15) // 16) * 16


def _critic_kernel(state_ref, action_ref, w_ref, b_ref, q_ref):
    """Fused TD3 twin-critic forward.

    state_ref : [B, SP]               f32   (state zero-padded to SP cols)
    action_ref: [B, AP]               f32   (action zero-padded to AP cols)
    w_ref     : [SP+AP+256+16, 512]   bf16  (packed weights, layout above)
    b_ref     : [3, 512]              f32   (row0=[b1|b4], row1=[b2|b5],
                                             row2: col0=b3, col1=b6)
    q_ref     : [B, 2]                f32   (col0 = q1, col1 = q2)
    """
    sp = state_ref.shape[1]          # padded state_dim  (multiple of 16)
    ap = action_ref.shape[1]         # padded action_dim (multiple of 16)
    r2 = sp + ap                     # first row of the [w2 | w5] block
    r3 = r2 + HIDDEN                 # row holding [w3^T | w6^T]

    s = state_ref[...].astype(jnp.bfloat16)
    a = action_ref[...].astype(jnp.bfloat16)

    # ---- Layer 1: both heads fused (N = 512). The state/action row-split of the
    #      packed weight replaces the host-side `sa = concat([state, action], 1)`.
    hg = jnp.dot(s, w_ref[0:sp, :], preferred_element_type=jnp.float32)
    hg = hg + jnp.dot(a, w_ref[sp:r2, :], preferred_element_type=jnp.float32)
    hg = jnp.maximum(hg + b_ref[0:1, :], 0.0)                       # [B, 512] f32

    # ---- Layer 2: two separate K=256,N=256 matmuls; bias+ReLU per half (no
    #      lane-dim concatenate on the serial path).
    h = jnp.dot(hg[:, 0:HIDDEN].astype(jnp.bfloat16), w_ref[r2:r3, 0:HIDDEN],
                preferred_element_type=jnp.float32)
    g = jnp.dot(hg[:, HIDDEN:].astype(jnp.bfloat16), w_ref[r2:r3, HIDDEN:],
                preferred_element_type=jnp.float32)
    h = jnp.maximum(h + b_ref[1:2, 0:HIDDEN], 0.0)                  # [B, 256] f32
    g = jnp.maximum(g + b_ref[1:2, HIDDEN:], 0.0)                   # [B, 256] f32

    # ---- Layer 3: N=2 projection on the VPU/XLU (mul + cross-lane reduce)
    #      instead of a K=512 MXU weight push for 2 output columns.
    w36 = w_ref[r3:r3 + 1, :].astype(jnp.float32)                   # [1, 512]
    q1 = jnp.sum(h * w36[:, 0:HIDDEN], axis=-1, keepdims=True) + b_ref[2:3, 0:1]
    q2 = jnp.sum(g * w36[:, HIDDEN:], axis=-1, keepdims=True) + b_ref[2:3, 1:2]

    q_ref[...] = jnp.concatenate([q1, q2], axis=1).astype(q_ref.dtype)


def _pad_cols(x, target):
    pad = target - x.shape[1]
    if pad == 0:
        return x
    return jnp.pad(x, ((0, 0), (0, pad)))


@jax.jit
def critic_forward(state, action, packed_params):
    """Replicates Critic.forward(state, action) -> (q1, q2).

    NOTE: if the training step evaluates the critic several times with the same
    weights (online + target critic, actor update), stack those batches into a
    single call — extra batch rows are nearly free vs. re-pushing the weights.
    """
    w_packed, biases = packed_params
    B = state.shape[0]
    sp = _pad16(state.shape[1])
    ap = _pad16(action.shape[1])
    state_p = _pad_cols(state, sp)
    action_p = _pad_cols(action, ap)
    operands = (state_p, action_p, w_packed, biases)

    if B >= 2 * _BATCH_TILE and B % _BATCH_TILE == 0:
        # Training-sized batch: parallel batch grid axis (second TC on v7x);
        # weights/biases stay resident across grid steps.
        q = pl.pallas_call(
            _critic_kernel,
            out_shape=jax.ShapeDtypeStruct((B, 2), jnp.float32),
            grid=(B // _BATCH_TILE,),
            in_specs=[
                pl.BlockSpec((_BATCH_TILE, sp), lambda i: (i, 0)),
                pl.BlockSpec((_BATCH_TILE, ap), lambda i: (i, 0)),
                pl.BlockSpec(w_packed.shape, lambda i: (0, 0)),
                pl.BlockSpec(biases.shape, lambda i: (0, 0)),
            ],
            out_specs=pl.BlockSpec((_BATCH_TILE, 2), lambda i: (i, 0)),
            compiler_params=pltpu.CompilerParams(
                dimension_semantics=("parallel",)),
        )(*operands)
    else:
        # Tiny batch: grid-free, whole operands VMEM-resident (<1 MiB total).
        q = pl.pallas_call(
            _critic_kernel,
            out_shape=jax.ShapeDtypeStruct((B, 2), jnp.float32),
        )(*operands)

    return q[:, 0:1], q[:, 1:2]


def init_layer_params(key, state_dim, action_dim):
    """Per-layer (W [in,out], b [1,out]) in f32, torch.nn.Linear-style init."""
    sa_dim = state_dim + action_dim
    dims = [(sa_dim, HIDDEN), (HIDDEN, HIDDEN), (HIDDEN, 1),
            (sa_dim, HIDDEN), (HIDDEN, HIDDEN), (HIDDEN, 1)]
    layers = []
    for fan_in, fan_out in dims:
        key, kw, kb = jax.random.split(key, 3)
        bound = 1.0 / jnp.sqrt(float(fan_in))
        w = jax.random.uniform(kw, (fan_in, fan_out), jnp.float32, -bound, bound)
        b = jax.random.uniform(kb, (1, fan_out), jnp.float32, -bound, bound)
        layers.append((w, b))
    return layers


def pack_params(layers, state_dim, action_dim):
    """Pack the 6 Linear layers into (w_packed bf16, biases f32)."""
    (w1, b1), (w2, b2), (w3, b3), (w4, b4), (w5, b5), (w6, b6) = layers
    sp, ap = _pad16(state_dim), _pad16(action_dim)

    w14 = jnp.concatenate([w1, w4], axis=1)                       # [sa_dim, 512]
    blk_s = jnp.zeros((sp, _W), jnp.float32).at[:state_dim].set(w14[:state_dim])
    blk_a = jnp.zeros((ap, _W), jnp.float32).at[:action_dim].set(w14[state_dim:])
    blk_25 = jnp.concatenate([w2, w5], axis=1)                    # [256, 512]
    blk_36 = jnp.zeros((16, _W), jnp.float32)
    blk_36 = blk_36.at[0:1, 0:HIDDEN].set(w3.T).at[0:1, HIDDEN:].set(w6.T)
    w_packed = jnp.concatenate(
        [blk_s, blk_a, blk_25, blk_36], axis=0).astype(jnp.bfloat16)

    biases = jnp.zeros((3, _W), jnp.float32)
    biases = biases.at[0, 0:HIDDEN].set(b1[0]).at[0, HIDDEN:].set(b4[0])
    biases = biases.at[1, 0:HIDDEN].set(b2[0]).at[1, HIDDEN:].set(b5[0])
    biases = biases.at[2, 0].set(b3[0, 0]).at[2, 1].set(b6[0, 0])
    return (w_packed, biases)


def _reference_forward(state, action, layers):
    """Unfused pure-JAX reference (bf16 MXU inputs, f32 accumulation)."""
    (w1, b1), (w2, b2), (w3, b3), (w4, b4), (w5, b5), (w6, b6) = layers

    def lin(x, w, b):
        return jnp.dot(x.astype(jnp.bfloat16), w.astype(jnp.bfloat16),
                       preferred_element_type=jnp.float32) + b

    sa = jnp.concatenate([state, action], axis=1)
    h = jax.nn.relu(lin(sa, w1, b1))
    h = jax.nn.relu(lin(h, w2, b2))
    q1 = lin(h, w3, b3)
    g = jax.nn.relu(lin(sa, w4, b4))
    g = jax.nn.relu(lin(g, w5, b5))
    q2 = lin(g, w6, b6)
    return q1, q2


if __name__ == "__main__":
    state_dim, action_dim = 16, 8

    key = jax.random.PRNGKey(0)
    key, kp = jax.random.split(key)
    layers = init_layer_params(kp, state_dim, action_dim)
    params = pack_params(layers, state_dim, action_dim)

    # --- small-batch (grid-free) path -------------------------------------
    batch = 8
    key, ks, ka = jax.random.split(key, 3)
    state = jax.random.normal(ks, (batch, state_dim), jnp.float32)
    action = jax.random.normal(ka, (batch, action_dim), jnp.float32)

    q1, q2 = critic_forward(state, action, params)
    jax.block_until_ready((q1, q2))

    r1, r2 = _reference_forward(state, action, layers)
    assert q1.shape == (batch, 1) and q2.shape == (batch, 1)
    assert jnp.allclose(q1, r1, atol=2e-2, rtol=2e-2)
    assert jnp.allclose(q2, r2, atol=2e-2, rtol=2e-2)

    # --- training-sized batch (parallel grid) path -------------------------
    big = 256
    key, ks, ka = jax.random.split(key, 3)
    state_b = jax.random.normal(ks, (big, state_dim), jnp.float32)
    action_b = jax.random.normal(ka, (big, action_dim), jnp.float32)

    q1b, q2b = critic_forward(state_b, action_b, params)
    jax.block_until_ready((q1b, q2b))

    r1b, r2b = _reference_forward(state_b, action_b, layers)
    assert q1b.shape == (big, 1) and q2b.shape == (big, 1)
    assert jnp.allclose(q1b, r1b, atol=2e-2, rtol=2e-2)
    assert jnp.allclose(q2b, r2b, atol=2e-2, rtol=2e-2)

    print("KERNEL_OK")
</pallas_src>

<mosaic_0001>
module attributes {stable_mosaic.version = 11 : i64} {
  func.func @_critic_kernel(%arg0: memref<8x16xf32, #tpu.memory_space<vmem>>, %arg1: memref<8x16xf32, #tpu.memory_space<vmem>>, %arg2: memref<304x512xbf16, #tpu.memory_space<vmem>>, %arg3: memref<3x512xf32, #tpu.memory_space<vmem>>, %arg4: memref<8x2xf32, #tpu.memory_space<vmem>>) attributes {dimension_semantics = [], scalar_prefetch = 0 : i64, scratch_operands = 0 : i64, tpu.core_type = #tpu.core_type<tc>} {
    %c0 = arith.constant 0 : index
    %c0_0 = arith.constant 0 : index
    %0 = vector.load %arg0[%c0, %c0_0] : memref<8x16xf32, #tpu.memory_space<vmem>>, vector<8x16xf32>
    %1 = arith.truncf %0 : vector<8x16xf32> to vector<8x16xbf16>
    %c0_1 = arith.constant 0 : index
    %c0_2 = arith.constant 0 : index
    %2 = vector.load %arg1[%c0_1, %c0_2] : memref<8x16xf32, #tpu.memory_space<vmem>>, vector<8x16xf32>
    %3 = arith.truncf %2 : vector<8x16xf32> to vector<8x16xbf16>
    %c0_3 = arith.constant 0 : index
    %c0_4 = arith.constant 0 : index
    %4 = vector.load %arg2[%c0_3, %c0_4] : memref<304x512xbf16, #tpu.memory_space<vmem>>, vector<16x512xbf16>
    %cst = arith.constant dense<0.000000e+00> : vector<8x512xf32>
    %5 = tpu.matmul %1, %4, %cst {dimension_numbers = #tpu.dot_dimension_numbers<[1], [0], [0], [1], [0, 0, 1, 1], [], []>} : vector<8x16xbf16>, vector<16x512xbf16>, vector<8x512xf32> -> vector<8x512xf32>
    %c16 = arith.constant 16 : index
    %c0_5 = arith.constant 0 : index
    %6 = vector.load %arg2[%c16, %c0_5] : memref<304x512xbf16, #tpu.memory_space<vmem>>, vector<16x512xbf16>
    %cst_6 = arith.constant dense<0.000000e+00> : vector<8x512xf32>
    %7 = tpu.matmul %3, %6, %cst_6 {dimension_numbers = #tpu.dot_dimension_numbers<[1], [0], [0], [1], [0, 0, 1, 1], [], []>} : vector<8x16xbf16>, vector<16x512xbf16>, vector<8x512xf32> -> vector<8x512xf32>
    %8 = arith.addf %5, %7 : vector<8x512xf32>
    %c0_7 = arith.constant 0 : index
    %c0_8 = arith.constant 0 : index
    %9 = vector.load %arg3[%c0_7, %c0_8] : memref<3x512xf32, #tpu.memory_space<vmem>>, vector<1x512xf32>
    %10 = vector.broadcast %9 : vector<1x512xf32> to vector<8x512xf32>
    %11 = arith.addf %8, %10 : vector<8x512xf32>
    %cst_9 = arith.constant 0.000000e+00 : f32
    %12 = vector.broadcast %cst_9 : f32 to vector<8x512xf32>
    %13 = arith.maximumf %11, %12 : vector<8x512xf32>
    %14 = vector.extract_strided_slice %13 {offsets = [0, 0], sizes = [8, 256], strides = [1, 1]} : vector<8x512xf32> to vector<8x256xf32>
    %15 = arith.truncf %14 : vector<8x256xf32> to vector<8x256xbf16>
    %c32 = arith.constant 32 : index
    %c0_10 = arith.constant 0 : index
    %16 = vector.load %arg2[%c32, %c0_10] : memref<304x512xbf16, #tpu.memory_space<vmem>>, vector<256x256xbf16>
    %cst_11 = arith.constant dense<0.000000e+00> : vector<8x256xf32>
    %17 = tpu.matmul %15, %16, %cst_11 {dimension_numbers = #tpu.dot_dimension_numbers<[1], [0], [0], [1], [0, 0, 1, 1], [], []>} : vector<8x256xbf16>, vector<256x256xbf16>, vector<8x256xf32> -> vector<8x256xf32>
    %18 = vector.extract_strided_slice %13 {offsets = [0, 256], sizes = [8, 256], strides = [1, 1]} : vector<8x512xf32> to vector<8x256xf32>
    %19 = arith.truncf %18 : vector<8x256xf32> to vector<8x256xbf16>
    %c32_12 = arith.constant 32 : index
    %c256 = arith.constant 256 : index
    %20 = vector.load %arg2[%c32_12, %c256] : memref<304x512xbf16, #tpu.memory_space<vmem>>, vector<256x256xbf16>
    %cst_13 = arith.constant dense<0.000000e+00> : vector<8x256xf32>
    %21 = tpu.matmul %19, %20, %cst_13 {dimension_numbers = #tpu.dot_dimension_numbers<[1], [0], [0], [1], [0, 0, 1, 1], [], []>} : vector<8x256xbf16>, vector<256x256xbf16>, vector<8x256xf32> -> vector<8x256xf32>
    %c1 = arith.constant 1 : index
    %c0_14 = arith.constant 0 : index
    %22 = vector.load %arg3[%c1, %c0_14] : memref<3x512xf32, #tpu.memory_space<vmem>>, vector<1x256xf32>
    %23 = vector.broadcast %22 : vector<1x256xf32> to vector<8x256xf32>
    %24 = arith.addf %17, %23 : vector<8x256xf32>
    %cst_15 = arith.constant 0.000000e+00 : f32
    %25 = vector.broadcast %cst_15 : f32 to vector<8x256xf32>
    %26 = arith.maximumf %24, %25 : vector<8x256xf32>
    %c1_16 = arith.constant 1 : index
    %c256_17 = arith.constant 256 : index
    %27 = vector.load %arg3[%c1_16, %c256_17] : memref<3x512xf32, #tpu.memory_space<vmem>>, vector<1x256xf32>
    %28 = vector.broadcast %27 : vector<1x256xf32> to vector<8x256xf32>
    %29 = arith.addf %21, %28 : vector<8x256xf32>
    %cst_18 = arith.constant 0.000000e+00 : f32
    %30 = vector.broadcast %cst_18 : f32 to vector<8x256xf32>
    %31 = arith.maximumf %29, %30 : vector<8x256xf32>
    %c288 = arith.constant 288 : index
    %c0_19 = arith.constant 0 : index
    %32 = vector.load %arg2[%c288, %c0_19] : memref<304x512xbf16, #tpu.memory_space<vmem>>, vector<1x512xbf16>
    %33 = arith.extf %32 : vector<1x512xbf16> to vector<1x512xf32>
    %34 = vector.extract_strided_slice %33 {offsets = [0, 0], sizes = [1, 256], strides = [1, 1]} : vector<1x512xf32> to vector<1x256xf32>
    %35 = vector.broadcast %34 : vector<1x256xf32> to vector<8x256xf32>
    %36 = arith.mulf %26, %35 : vector<8x256xf32>
    %cst_20 = arith.constant dense<0.000000e+00> : vector<8xf32>
    %37 = vector.multi_reduction <add>, %36, %cst_20 [1] : vector<8x256xf32> to vector<8xf32>
    %38 = vector.shape_cast %37 : vector<8xf32> to vector<8x1xf32>
    %c2 = arith.constant 2 : index
    %c0_21 = arith.constant 0 : index
    %39 = vector.load %arg3[%c2, %c0_21] : memref<3x512xf32, #tpu.memory_space<vmem>>, vector<1x1xf32>
    %40 = vector.broadcast %39 : vector<1x1xf32> to vector<8x1xf32>
    %41 = arith.addf %38, %40 : vector<8x1xf32>
    %42 = vector.extract_strided_slice %33 {offsets = [0, 256], sizes = [1, 256], strides = [1, 1]} : vector<1x512xf32> to vector<1x256xf32>
    %43 = vector.broadcast %42 : vector<1x256xf32> to vector<8x256xf32>
    %44 = arith.mulf %31, %43 : vector<8x256xf32>
    %cst_22 = arith.constant dense<0.000000e+00> : vector<8xf32>
    %45 = vector.multi_reduction <add>, %44, %cst_22 [1] : vector<8x256xf32> to vector<8xf32>
    %46 = vector.shape_cast %45 : vector<8xf32> to vector<8x1xf32>
    %c2_23 = arith.constant 2 : index
    %c1_24 = arith.constant 1 : index
    %47 = vector.load %arg3[%c2_23, %c1_24] : memref<3x512xf32, #tpu.memory_space<vmem>>, vector<1x1xf32>
    %48 = vector.broadcast %47 : vector<1x1xf32> to vector<8x1xf32>
    %49 = arith.addf %46, %48 : vector<8x1xf32>
    %50 = tpu.concatenate %41, %49 in 1 : vector<8x1xf32>, vector<8x1xf32> -> vector<8x2xf32>
    %c0_25 = arith.constant 0 : index
    %c0_26 = arith.constant 0 : index
    %51 = vector.load %arg4[%c0_25, %c0_26] : memref<8x2xf32, #tpu.memory_space<vmem>>, vector<8x2xf32>
    tpu.vector_store %arg4[%c0_25, %c0_26], %50 {strides = array<i32>} : memref<8x2xf32, #tpu.memory_space<vmem>>, vector<8x2xf32>,
    return
  }
}

</mosaic_0001>

<bundles_post_ra>
// kernel: critic_forward.1
= control target key start
LH: loop header
LB: loop body
LE: loop exit
PB: predicated region body
PF: predicated region fallthrough
CT: control target
= control target key end

     0   :  { %9 = vsyncpa [#allocation3], 0  ;;  %s1261_s0 = inlined_call_operand.hbm [shape: f32[8,16], index: 0, kind: input, shape index: {}]   ;;  %s1262_s1 = inlined_call_operand.vmem [shape: f32[8,16], index: 1, kind: input, shape index: {}]   ;;  %s1263_s2 = inlined_call_operand.hbm [shape: bf16[304,512], index: 2, kind: input, shape index: {}]   ;;  %s1264_s3 = inlined_call_operand.vmem [shape: f32[3,512], index: 3, kind: input, shape index: {}]   ;;  %s1265_s4 = inlined_call_operand.vmem [shape: f32[8,2], index: 4, kind: output, shape index: {}]  }
   0x1   :  { %s16_s17 = sshll.u32 %s1261_s0, 4  ;;  %s17_s17 = int_to_ptr.hbm [resolvable:$true] %s16_s17 }
   0x2   :  { %10 = vsyncpa [#allocation5], 0  ;;  %s1200_s18 = smov [#allocation2]   ;;  %s28_s22 = sshll.u32 %s1263_s2, 4  ;;  %s29_s22 = int_to_ptr.hbm [resolvable:$true] %s28_s22 }
   0x3   :  { %s18_s19 = sshll.u32 %s1200_s18, 4  ;;  %s1201_s23 = smov [#allocation4]   ;;  %s19_s19 = int_to_ptr.vmem [resolvable:$true] %s18_s19 }
   0x4   :  { %21 = dma.hbm_to_vmem [thread:$0]  %s17_s17, 128, %s19_s19, [#allocation3]  }
   0x5   :  { %s30_s24 = sshll.u32 %s1201_s23, 4  ;;  %s1202_s25 = smov 256   ;;  %s31_s24 = int_to_ptr.vmem [resolvable:$true] %s30_s24 }
   0x6   :  { %s1203_s26 = smov 16  }
   0x7   :  { %36 = dma.hbm_to_vmem [thread:$0]  %s29_s22, 9728, %s31_s24, [#allocation5], %s1202_s25, %s1202_s25, %s1203_s26  }
   0x8   :  { %1196 = dma.done.wait [#allocation3], 128  }
   0x9   :  { %1197 = vsyncadd [#allocation3], 4294967168 }
   0xa   :  { %1198 = dma.done.wait [#allocation5], 9728  }
   0xb   :  { %1199 = vsyncadd [#allocation5], 4294957568  ;;  %v775_v0 = vld [vmem:[#allocation4 + $0x20] sm:$0xf]  ;;  %v1077_v1 = vld [vmem:[#allocation4 + $0x2c] sm:$0xf0] }
   0xc   :  { %v1075_v2 = vld [vmem:[#allocation4 + $0x24] sm:$0xf]  ;;  %v776_v3 = vor.u32 %v1077_v1, %v775_v0  ;;  %v777_v4 = vld [vmem:[#allocation4 + $0x30] sm:$0xf0]  ;;  %v783_v5 = vld [vmem:[#allocation4 + $0x28] sm:$0xf] }
   0xd   :  { %v1078_v6 = vld [vmem:[#allocation4 + $0x34] sm:$0xf0]  ;;  %v780_v7 = vor.u32 %v1075_v2, %v777_v4  ;;  %v1076_v9 = vld [vmem:[#allocation4 + $0x2c] sm:$0xf]  ;;  %v785_v10 = vld [vmem:[#allocation4 + $0x38] sm:$0xf0] }
   0xe   :  { %v784_v8 = vor.u32 %v1078_v6, %v783_v5  ;;  %v50_v11 = vld [vmem:[%s1262_s1] sm:$0xff]  ;;  %vm80_vm0 = vcmask 130048   ;;  %91 = vmatpush.bf16.msra.mxu0 %v776_v3  ;;  %v788_v12 = vor.u32 %v1076_v9, %v785_v10  ;;  %v795_v14 = vld [vmem:[#allocation4] sm:$0xf]  ;;  %v1073_v15 = vld [vmem:[#allocation4 + $0xc] sm:$0xf0] }
   0xf   :  { %v51_v13 = vpack.c.bf16 %v50_v11, %v50_v11  ;;  %v1071_v16 = vld [vmem:[#allocation4 + $0x4] sm:$0xf]  ;;  %104 = vmatpush.bf16.msra.mxu1 %v780_v7  ;;  %v796_v17 = vor.u32 %v1073_v15, %v795_v14  ;;  %v797_v18 = vld [vmem:[#allocation4 + $0x10] sm:$0xf0]  ;;  %v803_v19 = vld [vmem:[#allocation4 + $0x8] sm:$0xf] }
  0x10   :  { %117 = vmatpush.bf16.msra.mxu2 %v784_v8  ;;  %v1074_v20 = vld [vmem:[#allocation4 + $0x14] sm:$0xf0]  ;;  %130 = vmatpush.bf16.msra.mxu3 %v788_v12  ;;  %v800_v21 = vor.u32 %v1071_v16, %v797_v18  ;;  %v1072_v23 = vld [vmem:[#allocation4 + $0xc] sm:$0xf]  ;;  %v805_v24 = vld [vmem:[#allocation4 + $0x18] sm:$0xf0] }
  0x11   :  { %v804_v22 = vor.u32 %v1074_v20, %v803_v19  ;;  %789 = vmatmul.msk.bf16.vlgmr.msra.gmra.mxu0 %vm80_vm0, %v51_v13  ;;  %v808_v25 = vor.u32 %v1072_v23, %v805_v24  ;;  %v872_v26 = vld [vmem:[#allocation4 + $0x120] sm:$0xf]  ;;  %v1094_v27 = vld [vmem:[#allocation4 + $0x12c] sm:$0xf0]  ;;  %v1093_v31 = vld [vmem:[#allocation4 + $0x124] sm:$0xf] }
  0x12   :  { %v936_v28 = vld [vmem:[#allocation4 + $0x220] sm:$0xf]  ;;  %790 = vmatmul.msk.bf16.vlgmr.msra.gmra.mxu1 %vm80_vm0, %v51_v13  ;;  %v873_v29 = vor.u32 %v1094_v27, %v872_v26  ;;  %v1110_v30 = vld [vmem:[#allocation4 + $0x22c] sm:$0xf0]  ;;  %v874_v32 = vld [vmem:[#allocation4 + $0x130] sm:$0xf0]  ;;  %166 = vmatpush.bf16.msrb.mxu0 %v796_v17 }
  0x13   :  { %791 = vmatmul.msk.bf16.vlgmr.msra.gmra.mxu2 %vm80_vm0, %v51_v13  ;;  %792 = vmatmul.msk.bf16.vlgmr.msra.gmra.mxu3 %vm80_vm0, %v51_v13  ;;  %v937_v33 = vor.u32 %v1110_v30, %v936_v28  ;;  %v877_v34 = vor.u32 %v1093_v31, %v874_v32  ;;  %v1109_v35 = vld [vmem:[#allocation4 + $0x224] sm:$0xf]  ;;  %v938_v36 = vld [vmem:[#allocation4 + $0x230] sm:$0xf0]  ;;  %v864_v37 = vld [vmem:[#allocation4 + $0x100] sm:$0xf] }
  0x14   :  { %179 = vmatpush.bf16.msrb.mxu1 %v800_v21  ;;  %192 = vmatpush.bf16.msrb.mxu2 %v804_v22  ;;  %v941_v38 = vor.u32 %v1109_v35, %v938_v36  ;;  %v1092_v39 = vld [vmem:[#allocation4 + $0x10c] sm:$0xf0]  ;;  %v928_v40 = vld [vmem:[#allocation4 + $0x200] sm:$0xf]  ;;  %v1091_v43 = vld [vmem:[#allocation4 + $0x104] sm:$0xf] }
  0x15   :  { %v1108_v41 = vld [vmem:[#allocation4 + $0x20c] sm:$0xf0]  ;;  %205 = vmatpush.bf16.msrb.mxu3 %v808_v25  ;;  %v865_v42 = vor.u32 %v1092_v39, %v864_v37  ;;  %v866_v44 = vld [vmem:[#allocation4 + $0x110] sm:$0xf0]  ;;  %v1107_v45 = vld [vmem:[#allocation4 + $0x204] sm:$0xf] }
  0x16   :  { %464 = vmatpush.bf16.msra.mxu0 %v873_v29  ;;  %v929_v46 = vor.u32 %v1108_v41, %v928_v40  ;;  %v869_v47 = vor.u32 %v1091_v43, %v866_v44  ;;  %v930_v48 = vld [vmem:[#allocation4 + $0x210] sm:$0xf0]  ;;  %v856_v49 = vld [vmem:[#allocation4 + $0xe0] sm:$0xf]  ;;  %v1090_v50 = vld [vmem:[#allocation4 + $0xec] sm:$0xf0] }
  0x17   :  { %v933_v51 = vor.u32 %v1107_v45, %v930_v48  ;;  %v920_v52 = vld [vmem:[#allocation4 + $0x1e0] sm:$0xf]  ;;  %v1106_v53 = vld [vmem:[#allocation4 + $0x1ec] sm:$0xf0]  ;;  %v1089_v54 = vld [vmem:[#allocation4 + $0xe4] sm:$0xf]  ;;  %v857_v58 = vor.u32 %v1090_v50, %v856_v49 }
  0x18   :  { %477 = vmatpush.bf16.msra.mxu1 %v937_v33  ;;  %490 = vmatpush.bf16.msra.mxu2 %v877_v34  ;;  %v858_v55 = vld [vmem:[#allocation4 + $0xf0] sm:$0xf0]  ;;  %v1105_v56 = vld [vmem:[#allocation4 + $0x1e4] sm:$0xf]  ;;  %v48_v59 = vld [vmem:[#allocation2] sm:$0xff]  ;;  %v921_v60 = vor.u32 %v1106_v53, %v920_v52  ;;  %vm763_vm1 = vcmask 7168  }
  0x19   :  { %503 = vmatpush.bf16.msra.mxu3 %v941_v38  ;;  %v922_v57 = vld [vmem:[#allocation4 + $0x1f0] sm:$0xf0]  ;;  %v861_v61 = vor.u32 %v1089_v54, %v858_v55  ;;  %v848_v63 = vld [vmem:[#allocation4 + $0xc0] sm:$0xf]  ;;  %v1088_v0 = vld [vmem:[#allocation4 + $0xcc] sm:$0xf0]  ;;  %v49_v2 = vpack.c.bf16 %v48_v59, %v48_v59 }
  0x1a   :  { %465 = vmatpush.bf16.msra.mxu0 %v865_v42  ;;  %v925_v62 = vor.u32 %v1105_v56, %v922_v57  ;;  %v912_v1 = vld [vmem:[#allocation4 + $0x1c0] sm:$0xf]  ;;  %v1104_v3 = vld [vmem:[#allocation4 + $0x1cc] sm:$0xf0]  ;;  %v1087_v4 = vld [vmem:[#allocation4 + $0xc4] sm:$0xf]  ;;  %v849_v8 = vor.u32 %v1088_v0, %v848_v63 }
  0x1b   :  { %v850_v5 = vld [vmem:[#allocation4 + $0xd0] sm:$0xf0]  ;;  %v1103_v6 = vld [vmem:[#allocation4 + $0x1c4] sm:$0xf]  ;;  %v913_v9 = vor.u32 %v1104_v3, %v912_v1  ;;  %v840_v11 = vld [vmem:[#allocation4 + $0xa0] sm:$0xf] }
  0x1c   :  { %478 = vmatpush.bf16.msra.mxu1 %v929_v46  ;;  %491 = vmatpush.bf16.msra.mxu2 %v869_v47  ;;  %v914_v7 = vld [vmem:[#allocation4 + $0x1d0] sm:$0xf0]  ;;  %v853_v10 = vor.u32 %v1087_v4, %v850_v5  ;;  %v1086_v12 = vld [vmem:[#allocation4 + $0xac] sm:$0xf0]  ;;  %v904_v13 = vld [vmem:[#allocation4 + $0x1a0] sm:$0xf] }
  0x1d   :  { %504 = vmatpush.bf16.msra.mxu3 %v933_v51  ;;  %v917_v14 = vor.u32 %v1103_v6, %v914_v7  ;;  %v1102_v15 = vld [vmem:[#allocation4 + $0x1ac] sm:$0xf0]  ;;  %v1085_v16 = vld [vmem:[#allocation4 + $0xa4] sm:$0xf]  ;;  %v842_v17 = vld [vmem:[#allocation4 + $0xb0] sm:$0xf0]  ;;  %v841_v20 = vor.u32 %v1086_v12, %v840_v11 }
  0x1e   :  { %466 = vmatpush.bf16.msra.mxu0 %v857_v58  ;;  %v1101_v18 = vld [vmem:[#allocation4 + $0x1a4] sm:$0xf]  ;;  %v906_v19 = vld [vmem:[#allocation4 + $0x1b0] sm:$0xf0]  ;;  %v905_v21 = vor.u32 %v1102_v15, %v904_v13  ;;  %v845_v22 = vor.u32 %v1085_v16, %v842_v17  ;;  %v832_v24 = vld [vmem:[#allocation4 + $0x80] sm:$0xf] }
  0x1f   :  { %v909_v23 = vor.u32 %v1101_v18, %v906_v19  ;;  %v1084_v25 = vld [vmem:[#allocation4 + $0x8c] sm:$0xf0]  ;;  %v896_v26 = vld [vmem:[#allocation4 + $0x180] sm:$0xf]  ;;  %v1083_v29 = vld [vmem:[#allocation4 + $0x84] sm:$0xf] }
  0x20   :  { %479 = vmatpush.bf16.msra.mxu1 %v921_v60  ;;  %492 = vmatpush.bf16.msra.mxu2 %v861_v61  ;;  %v833_v27 = vor.u32 %v1084_v25, %v832_v24  ;;  %v1100_v28 = vld [vmem:[#allocation4 + $0x18c] sm:$0xf0]  ;;  %v834_v30 = vld [vmem:[#allocation4 + $0x90] sm:$0xf0]  ;;  %v1099_v33 = vld [vmem:[#allocation4 + $0x184] sm:$0xf] }
  0x21   :  { %505 = vmatpush.bf16.msra.mxu3 %v925_v62  ;;  %809 = vmatmul.msk.bf16.vlgmr.msrb.gmra.mxu0 %vm80_vm0, %v49_v2  ;;  %v897_v31 = vor.u32 %v1100_v28, %v896_v26  ;;  %v837_v32 = vor.u32 %v1083_v29, %v834_v30  ;;  %v898_v34 = vld [vmem:[#allocation4 + $0x190] sm:$0xf0]  ;;  %v824_v35 = vld [vmem:[#allocation4 + $0x60] sm:$0xf]  ;;  %v1082_v37 = vld [vmem:[#allocation4 + $0x6c] sm:$0xf0] }
  0x22   :  { %810 = vmatmul.msk.bf16.vlgmr.msrb.gmra.mxu1 %vm80_vm0, %v49_v2  ;;  %467 = vmatpush.bf16.msra.mxu0 %v849_v8  ;;  %v901_v36 = vor.u32 %v1099_v33, %v898_v34  ;;  %v888_v38 = vld [vmem:[#allocation4 + $0x160] sm:$0xf]  ;;  %v1098_v39 = vld [vmem:[#allocation4 + $0x16c] sm:$0xf0]  ;;  %v825_v40 = vor.u32 %v1082_v37, %v824_v35  ;;  %v1081_v42 = vld [vmem:[#allocation4 + $0x64] sm:$0xf] }
  0x23   :  { %811 = vmatmul.msk.bf16.vlgmr.msrb.gmra.mxu2 %vm80_vm0, %v49_v2  ;;  %812 = vmatmul.msk.bf16.vlgmr.msrb.gmra.mxu3 %vm80_vm0, %v49_v2  ;;  %v889_v41 = vor.u32 %v1098_v39, %v888_v38  ;;  %v826_v43 = vld [vmem:[#allocation4 + $0x70] sm:$0xf0]  ;;  %v1097_v44 = vld [vmem:[#allocation4 + $0x164] sm:$0xf]  ;;  %v816_v48 = vld [vmem:[#allocation4 + $0x40] sm:$0xf] }
  0x24   :  { %480 = vmatpush.bf16.msra.mxu1 %v913_v9  ;;  %493 = vmatpush.bf16.msra.mxu2 %v853_v10  ;;  %v829_v45 = vor.u32 %v1081_v42, %v826_v43  ;;  %v890_v46 = vld [vmem:[#allocation4 + $0x170] sm:$0xf0]  ;;  %v1080_v49 = vld [vmem:[#allocation4 + $0x4c] sm:$0xf0]  ;;  %v880_v50 = vld [vmem:[#allocation4 + $0x140] sm:$0xf] }
  0x25   :  { %506 = vmatpush.bf16.msra.mxu3 %v917_v14  ;;  %v893_v47 = vor.u32 %v1097_v44, %v890_v46  ;;  %v817_v51 = vor.u32 %v1080_v49, %v816_v48  ;;  %v1096_v52 = vld [vmem:[#allocation4 + $0x14c] sm:$0xf0]  ;;  %v1079_v53 = vld [vmem:[#allocation4 + $0x44] sm:$0xf]  ;;  %v818_v54 = vld [vmem:[#allocation4 + $0x50] sm:$0xf0] }
  0x26   :  { %468 = vmatpush.bf16.msra.mxu0 %v841_v20  ;;  %v881_v55 = vor.u32 %v1096_v52, %v880_v50  ;;  %v821_v56 = vor.u32 %v1079_v53, %v818_v54  ;;  %v1095_v57 = vld [vmem:[#allocation4 + $0x144] sm:$0xf]  ;;  %v882_v58 = vld [vmem:[#allocation4 + $0x150] sm:$0xf0]  ;;  %v1001_v59 = vld [vmem:[#allocation4 + $0x128] sm:$0xf] }
  0x27   :  { %v885_v60 = vor.u32 %v1095_v57, %v882_v58  ;;  %v1126_v61 = vld [vmem:[#allocation4 + $0x134] sm:$0xf0]  ;;  %v1065_v62 = vld [vmem:[#allocation4 + $0x228] sm:$0xf]  ;;  %v1125_v2 = vld [vmem:[#allocation4 + $0x12c] sm:$0xf] }
  0x28   :  { %481 = vmatpush.bf16.msra.mxu1 %v905_v21  ;;  %494 = vmatpush.bf16.msra.mxu2 %v845_v22  ;;  %v1142_v63 = vld [vmem:[#allocation4 + $0x234] sm:$0xf0]  ;;  %v1002_v0 = vor.u32 %v1126_v61, %v1001_v59  ;;  %v1003_v3 = vld [vmem:[#allocation4 + $0x138] sm:$0xf0]  ;;  %v1141_v4 = vld [vmem:[#allocation4 + $0x22c] sm:$0xf] }
  0x29   :  { %507 = vmatpush.bf16.msra.mxu3 %v909_v23  ;;  %v1066_v1 = vor.u32 %v1142_v63, %v1065_v62  ;;  %v1006_v5 = vor.u32 %v1125_v2, %v1003_v3  ;;  %v1067_v6 = vld [vmem:[#allocation4 + $0x238] sm:$0xf0]  ;;  %v993_v7 = vld [vmem:[#allocation4 + $0x108] sm:$0xf]  ;;  %v1124_v8 = vld [vmem:[#allocation4 + $0x114] sm:$0xf0] }
  0x2a   :  { %469 = vmatpush.bf16.msra.mxu0 %v833_v27  ;;  %v1070_v9 = vor.u32 %v1141_v4, %v1067_v6  ;;  %v994_v10 = vor.u32 %v1124_v8, %v993_v7  ;;  %v1057_v11 = vld [vmem:[#allocation4 + $0x208] sm:$0xf]  ;;  %v1140_v12 = vld [vmem:[#allocation4 + $0x214] sm:$0xf0]  ;;  %v1123_v13 = vld [vmem:[#allocation4 + $0x10c] sm:$0xf] }
  0x2b   :  { %v1058_v14 = vor.u32 %v1140_v12, %v1057_v11  ;;  %v995_v15 = vld [vmem:[#allocation4 + $0x118] sm:$0xf0]  ;;  %v1139_v16 = vld [vmem:[#allocation4 + $0x20c] sm:$0xf]  ;;  %v985_v20 = vld [vmem:[#allocation4 + $0xe8] sm:$0xf] }
  0x2c   :  { %482 = vmatpush.bf16.msra.mxu1 %v897_v31  ;;  %495 = vmatpush.bf16.msra.mxu2 %v837_v32  ;;  %v1059_v17 = vld [vmem:[#allocation4 + $0x218] sm:$0xf0]  ;;  %v998_v18 = vor.u32 %v1123_v13, %v995_v15  ;;  %v1122_v21 = vld [vmem:[#allocation4 + $0xf4] sm:$0xf0]  ;;  %v1049_v22 = vld [vmem:[#allocation4 + $0x1e8] sm:$0xf] }
  0x2d   :  { %508 = vmatpush.bf16.msra.mxu3 %v901_v36  ;;  %v1062_v19 = vor.u32 %v1139_v16, %v1059_v17  ;;  %v986_v23 = vor.u32 %v1122_v21, %v985_v20  ;;  %v1138_v24 = vld [vmem:[#allocation4 + $0x1f4] sm:$0xf0]  ;;  %v1121_v25 = vld [vmem:[#allocation4 + $0xec] sm:$0xf]  ;;  %v987_v27 = vld [vmem:[#allocation4 + $0xf8] sm:$0xf0] }
  0x2e   :  { %470 = vmatpush.bf16.msra.mxu0 %v825_v40  ;;  %v1050_v26 = vor.u32 %v1138_v24, %v1049_v22  ;;  %v1137_v28 = vld [vmem:[#allocation4 + $0x1ec] sm:$0xf]  ;;  %v1051_v29 = vld [vmem:[#allocation4 + $0x1f8] sm:$0xf0]  ;;  %v990_v30 = vor.u32 %v1121_v25, %v987_v27  ;;  %v977_v32 = vld [vmem:[#allocation4 + $0xc8] sm:$0xf] }
  0x2f   :  { %v1054_v31 = vor.u32 %v1137_v28, %v1051_v29  ;;  %v1120_v33 = vld [vmem:[#allocation4 + $0xd4] sm:$0xf0]  ;;  %v1041_v34 = vld [vmem:[#allocation4 + $0x1c8] sm:$0xf]  ;;  %v1119_v37 = vld [vmem:[#allocation4 + $0xcc] sm:$0xf] }
  0x30   :  { %483 = vmatpush.bf16.msra.mxu1 %v889_v41  ;;  %496 = vmatpush.bf16.msra.mxu2 %v829_v45  ;;  %v978_v35 = vor.u32 %v1120_v33, %v977_v32  ;;  %v1136_v36 = vld [vmem:[#allocation4 + $0x1d4] sm:$0xf0]  ;;  %v979_v38 = vld [vmem:[#allocation4 + $0xd8] sm:$0xf0]  ;;  %v1135_v41 = vld [vmem:[#allocation4 + $0x1cc] sm:$0xf] }
  0x31   :  { %509 = vmatpush.bf16.msra.mxu3 %v893_v47  ;;  %v1042_v39 = vor.u32 %v1136_v36, %v1041_v34  ;;  %v982_v40 = vor.u32 %v1119_v37, %v979_v38  ;;  %v1043_v42 = vld [vmem:[#allocation4 + $0x1d8] sm:$0xf0]  ;;  %v969_v44 = vld [vmem:[#allocation4 + $0xa8] sm:$0xf]  ;;  %v1118_v45 = vld [vmem:[#allocation4 + $0xb4] sm:$0xf0] }
  0x32   :  { %471 = vmatpush.bf16.msra.mxu0 %v817_v51  ;;  %v1046_v43 = vor.u32 %v1135_v41, %v1043_v42  ;;  %v970_v46 = vor.u32 %v1118_v45, %v969_v44  ;;  %v1033_v47 = vld [vmem:[#allocation4 + $0x1a8] sm:$0xf]  ;;  %v1134_v48 = vld [vmem:[#allocation4 + $0x1b4] sm:$0xf0]  ;;  %v1117_v49 = vld [vmem:[#allocation4 + $0xac] sm:$0xf] }
  0x33   :  { %v1034_v50 = vor.u32 %v1134_v48, %v1033_v47  ;;  %v971_v51 = vld [vmem:[#allocation4 + $0xb8] sm:$0xf0]  ;;  %v1133_v52 = vld [vmem:[#allocation4 + $0x1ac] sm:$0xf]  ;;  %v1116_v57 = vld [vmem:[#allocation4 + $0x94] sm:$0xf0] }
  0x34   :  { %484 = vmatpush.bf16.msra.mxu1 %v881_v55  ;;  %497 = vmatpush.bf16.msra.mxu2 %v821_v56  ;;  %v1035_v53 = vld [vmem:[#allocation4 + $0x1b8] sm:$0xf0]  ;;  %v974_v54 = vor.u32 %v1117_v49, %v971_v51  ;;  %v961_v56 = vld [vmem:[#allocation4 + $0x88] sm:$0xf]  ;;  %v1115_v61 = vld [vmem:[#allocation4 + $0x8c] sm:$0xf] }
  0x35   :  { %510 = vmatpush.bf16.msra.mxu3 %v885_v60  ;;  %v1038_v55 = vor.u32 %v1133_v52, %v1035_v53  ;;  %v1025_v58 = vld [vmem:[#allocation4 + $0x188] sm:$0xf]  ;;  %v962_v59 = vor.u32 %v1116_v57, %v961_v56  ;;  %v1132_v60 = vld [vmem:[#allocation4 + $0x194] sm:$0xf0]  ;;  %v963_v62 = vld [vmem:[#allocation4 + $0x98] sm:$0xf0] }
  0x36   :  { %685 = vmatpush.bf16.msrb.mxu0 %v1002_v0  ;;  %v1026_v63 = vor.u32 %v1132_v60, %v1025_v58  ;;  %v966_v0 = vor.u32 %v1115_v61, %v963_v62  ;;  %v1027_v2 = vld [vmem:[#allocation4 + $0x198] sm:$0xf0]  ;;  %v1114_v6 = vld [vmem:[#allocation4 + $0x74] sm:$0xf0]  ;;  %v1017_v7 = vld [vmem:[#allocation4 + $0x168] sm:$0xf] }
  0x37   :  { %v955_v11 = vld [vmem:[#allocation4 + $0x78] sm:$0xf0]  ;;  %v945_v16 = vld [vmem:[#allocation4 + $0x48] sm:$0xf]  ;;  %v1128_v20 = vld [vmem:[#allocation4 + $0x154] sm:$0xf0] }
  0x38   :  { %698 = vmatpush.bf16.msrb.mxu1 %v1066_v1  ;;  %711 = vmatpush.bf16.msrb.mxu2 %v1006_v5  ;;  %v1131_v1 = vld [vmem:[#allocation4 + $0x18c] sm:$0xf]  ;;  %v953_v5 = vld [vmem:[#allocation4 + $0x68] sm:$0xf]  ;;  %v1019_v15 = vld [vmem:[#allocation4 + $0x178] sm:$0xf0] }
  0x39   :  { %724 = vmatpush.bf16.msrb.mxu3 %v1070_v9  ;;  %v1030_v4 = vor.u32 %v1131_v1, %v1027_v2  ;;  %v1130_v9 = vld [vmem:[#allocation4 + $0x174] sm:$0xf0]  ;;  %v954_v12 = vor.u32 %v1114_v6, %v953_v5  ;;  %v1111_v22 = vld [vmem:[#allocation4 + $0x4c] sm:$0xf]  ;;  %v1011_v25 = vld [vmem:[#allocation4 + $0x158] sm:$0xf0] }
  0x3a   :  { %686 = vmatpush.bf16.msrb.mxu0 %v994_v10  ;;  %v1113_v10 = vld [vmem:[#allocation4 + $0x6c] sm:$0xf]  ;;  %v1018_v13 = vor.u32 %v1130_v9, %v1017_v7  ;;  %v211_v34 = vld [vmem:[%s1264_s3] ss:$4 sm:$0xf]  ;;  %vm765_vm2 = vcmask 15360  }
  0x3b   :  { %v958_v17 = vor.u32 %v1113_v10, %v955_v11  ;;  %v1127_v24 = vld [vmem:[#allocation4 + $0x14c] sm:$0xf]  ;;  %v213_v36 = vperm.slane %v211_v34, 0  ;;  %v216_v56 = vperm.slane %v211_v34, 3  ;;  %v739_v6 = vld [vmem:[#allocation4 + $0x240] sm:$0x11] }
  0x3c   :  { %699 = vmatpush.bf16.msrb.mxu1 %v1058_v14  ;;  %712 = vmatpush.bf16.msrb.mxu2 %v998_v18  ;;  %v1129_v14 = vld [vmem:[#allocation4 + $0x16c] sm:$0xf]  ;;  %v1112_v18 = vld [vmem:[#allocation4 + $0x54] sm:$0xf0]  ;;  %v1014_v32 = vor.u32 %v1127_v24, %v1011_v25  ;;  %v741_v9 = vunpack.c.l.bf16 %v739_v6  ;;  %v742_v10 = vunpack.c.h.bf16 %v739_v6 }
  0x3d   :  { %725 = vmatpush.bf16.msrb.mxu3 %v1062_v19  ;;  %v1009_v19 = vld [vmem:[#allocation4 + $0x148] sm:$0xf]  ;;  %v1022_v21 = vor.u32 %v1129_v14, %v1019_v15  ;;  %v813_v1 = vld [vmem:[%s1264_s3 + $0x1] ss:$4 sm:$0x3] }
  0x3e   :  { %687 = vmatpush.bf16.msrb.mxu0 %v986_v23  ;;  %v947_v23 = vld [vmem:[#allocation4 + $0x58] sm:$0xf0]  ;;  %v1010_v27 = vor.u32 %v1128_v20, %v1009_v19  ;;  %v300_v2 = vperm.slane %v813_v1, 0  ;;  %v301_v7 = vperm.slane %v813_v1, 1  ;;  %v746_v19 = vperm.slane %v742_v10, 0 }
  0x3f   :  { %v950_v29 = vor.u32 %v1111_v22, %v947_v23  ;;  %v942_v20 = vld [vmem:[%s1264_s3 + $0x9] ss:$4 sm:$0x3] }
  0x40   :  { %700 = vmatpush.bf16.msrb.mxu1 %v1050_v26  ;;  %713 = vmatpush.bf16.msrb.mxu2 %v990_v30  ;;  %v946_v26 = vor.u32 %v1112_v18, %v945_v16  ;;  %v745_v18 = vperm.slane %v741_v9, 0  ;;  %v521_v22 = vperm.slane %v942_v20, 0 }
  0x41   :  { %726 = vmatpush.bf16.msrb.mxu3 %v1054_v31 }
  0x42   :  { %688 = vmatpush.bf16.msrb.mxu0 %v978_v35 }
  0x44   :  { %701 = vmatpush.bf16.msrb.mxu1 %v1042_v39  ;;  %714 = vmatpush.bf16.msrb.mxu2 %v982_v40  ;;  %v214_v39 = vperm.slane %v211_v34, 1 }
  0x45   :  { %727 = vmatpush.bf16.msrb.mxu3 %v1046_v43 }
  0x46   :  { %689 = vmatpush.bf16.msrb.mxu0 %v970_v46 }
  0x48   :  { %702 = vmatpush.bf16.msrb.mxu1 %v1034_v50  ;;  %715 = vmatpush.bf16.msrb.mxu2 %v974_v54  ;;  %v215_v54 = vperm.slane %v211_v34, 2 }
  0x49   :  { %728 = vmatpush.bf16.msrb.mxu3 %v1038_v55 }
  0x4a   :  { %690 = vmatpush.bf16.msrb.mxu0 %v962_v59 }
  0x4c   :  { %703 = vmatpush.bf16.msrb.mxu1 %v1026_v63  ;;  %716 = vmatpush.bf16.msrb.mxu2 %v966_v0 }
  0x4d   :  { %729 = vmatpush.bf16.msrb.mxu3 %v1030_v4 }
  0x4e   :  { %691 = vmatpush.bf16.msrb.mxu0 %v954_v12 }
  0x50   :  { %704 = vmatpush.bf16.msrb.mxu1 %v1018_v13  ;;  %717 = vmatpush.bf16.msrb.mxu2 %v958_v17 }
  0x51   :  { %730 = vmatpush.bf16.msrb.mxu3 %v1022_v21 }
  0x52   :  { %692 = vmatpush.bf16.msrb.mxu0 %v946_v26 }
  0x54   :  { %705 = vmatpush.bf16.msrb.mxu1 %v1010_v27  ;;  %718 = vmatpush.bf16.msrb.mxu2 %v950_v29 }
  0x55   :  { %731 = vmatpush.bf16.msrb.mxu3 %v1014_v32  ;;  %v522_v32 = vperm.slane %v942_v20, 1 }
  0x8e   :  { %v93_v3 = vpop.f32.mrf.mxu0 }
  0x8f   :  { %v106_v8 = vpop.f32.mrf.mxu1 }
  0x96   :  { %v119_v28 = vpop.f32.mrf.mxu2  ;;  %v132_v30 = vpop.f32.mrf.mxu3 }
  0x97   :  { %v95_v31 = vpop.f32.mrf.mxu0  ;;  %v108_v33 = vpop.f32.mrf.mxu1 }
  0x98   :  { %v740_v31 = vld [vmem:[#allocation4 + $0x248] sm:$0x11] }
  0x99   :  { %v743_v34 = vunpack.c.l.bf16 %v740_v31 }
  0x9e   :  { %v121_v35 = vpop.f32.mrf.mxu2  ;;  %v134_v37 = vpop.f32.mrf.mxu3 }
  0x9f   :  { %v168_v38 = vpop.f32.mrf.mxu0  ;;  %v181_v41 = vpop.f32.mrf.mxu1  ;;  %v744_v35 = vunpack.c.h.bf16 %v740_v31 }
  0xa0   :  { %v169_v40 = vadd.f32 %v168_v38, %v93_v3  ;;  %v182_v42 = vadd.f32 %v181_v41, %v106_v8  ;;  %v755_v41 = vperm.slane %v743_v34, 0 }
  0xa2   :  { %v221_v43 = vadd.f32 %v213_v36, %v169_v40  ;;  %v222_v44 = vadd.f32 %v214_v39, %v182_v42 }
  0xa4   :  { %v225_v45 = vmax.f32 %v221_v43, 0.0  ;;  %v226_v46 = vmax.f32 %v222_v44, 0.0  ;;  %v756_v43 = vperm.slane %v744_v35, 0 }
  0xa6   :  { %v229_v47 = vpack.c.bf16 %v225_v45, %v225_v45  ;;  %v194_v48 = vpop.f32.mrf.mxu2  ;;  %v230_v49 = vpack.c.bf16 %v226_v46, %v226_v46  ;;  %v207_v50 = vpop.f32.mrf.mxu3 }
  0xa7   :  { %v170_v51 = vpop.f32.mrf.mxu0  ;;  %v183_v52 = vpop.f32.mrf.mxu1  ;;  %v195_v53 = vadd.f32 %v194_v48, %v119_v28  ;;  %v208_v55 = vadd.f32 %v207_v50, %v132_v30 }
  0xa8   :  { %472 = vmatmul.bf16.vlgmr.msra.gmra.mxu0 %v229_v47  ;;  %498 = vmatmul.bf16.vlgmr.msra.gmra.mxu2 %v229_v47  ;;  %v1147_v52 = vld [vmem:[%s1264_s3 + $0x2] ss:$0 sm:$0xff] }
  0xa9   :  { %485 = vmatmul.bf16.vlgmr.msra.gmra.mxu1 %v230_v49  ;;  %511 = vmatmul.bf16.vlgmr.msra.gmra.mxu3 %v230_v49  ;;  %v223_v57 = vadd.f32 %v215_v54, %v195_v53  ;;  %v224_v59 = vadd.f32 %v216_v56, %v208_v55 }
  0xab   :  { %v227_v61 = vmax.f32 %v223_v57, 0.0  ;;  %v228_v62 = vmax.f32 %v224_v59, 0.0 }
  0xad   :  { %v263_v63 = vpack.c.bf16 %v227_v61, %v227_v61  ;;  %v264_v0 = vpack.c.bf16 %v228_v62, %v228_v62 }
  0xae   :  { %v196_v58 = vpop.f32.mrf.mxu2  ;;  %v209_v60 = vpop.f32.mrf.mxu3 }
  0xb8   :  { %693 = vmatmul.bf16.vlgmr.msrb.gmra.mxu0 %v263_v63  ;;  %719 = vmatmul.bf16.vlgmr.msrb.gmra.mxu2 %v263_v63 }
  0xb9   :  { %706 = vmatmul.bf16.vlgmr.msrb.gmra.mxu1 %v264_v0  ;;  %732 = vmatmul.bf16.vlgmr.msrb.gmra.mxu3 %v264_v0 }
 0x125   :  { %v473_v3 = vpop.f32.mrf.mxu0 }
 0x126   :  { %v474_v4 = vadd.f32 %v473_v3, %v300_v2  ;;  %v486_v5 = vpop.f32.mrf.mxu1 }
 0x128   :  { %v487_v8 = vadd.f32 %v486_v5, %v474_v4 }
 0x12a   :  { %v516_v15 = vmax.f32 %v487_v8, 0.0 }
 0x12b   :  { %v499_v11 = vpop.f32.mrf.mxu2 }
 0x12c   :  { %v500_v12 = vadd.f32 %v499_v11, %v301_v7  ;;  %v512_v13 = vpop.f32.mrf.mxu3  ;;  %v747_v23 = vmul.f32 %v745_v18, %v516_v15 }
 0x12d   :  { %v475_v14 = vpop.f32.mrf.mxu0 }
 0x12e   :  { %v513_v16 = vadd.f32 %v512_v13, %v500_v12  ;;  %v488_v17 = vpop.f32.mrf.mxu1 }
 0x130   :  { %v517_v21 = vmax.f32 %v513_v16, 0.0 }
 0x132   :  { %v748_v24 = vmul.f32 %v746_v19, %v517_v21 }
 0x133   :  { %v501_v25 = vpop.f32.mrf.mxu2 }
 0x134   :  { %v514_v26 = vpop.f32.mrf.mxu3  ;;  %v749_v27 = vadd.f32 %v748_v24, %v747_v23 }
 0x135   :  { %v694_v28 = vpop.f32.mrf.mxu0 }
 0x136   :  { %v695_v29 = vadd.f32 %v694_v28, %v521_v22  ;;  %v707_v30 = vpop.f32.mrf.mxu1  ;;  %750 = vadd.xlane.f32.xlu0 %v749_v27 }
 0x138   :  { %v708_v33 = vadd.f32 %v707_v30, %v695_v29 }
 0x13a   :  { %v737_v40 = vmax.f32 %v708_v33, 0.0 }
 0x13b   :  { %v720_v36 = vpop.f32.mrf.mxu2 }
 0x13c   :  { %v721_v37 = vadd.f32 %v720_v36, %v522_v32  ;;  %v733_v38 = vpop.f32.mrf.mxu3  ;;  %v757_v46 = vmul.f32 %v755_v41, %v737_v40 }
 0x13d   :  { %v696_v39 = vpop.f32.mrf.mxu0 }
 0x13e   :  { %v734_v42 = vadd.f32 %v733_v38, %v721_v37  ;;  %v709_v44 = vpop.f32.mrf.mxu1 }
 0x140   :  { %v738_v45 = vmax.f32 %v734_v42, 0.0 }
 0x142   :  { %v758_v47 = vmul.f32 %v756_v43, %v738_v45 }
 0x143   :  { %v722_v48 = vpop.f32.mrf.mxu2 }
 0x144   :  { %v735_v49 = vpop.f32.mrf.mxu3  ;;  %v759_v50 = vadd.f32 %v758_v47, %v757_v46 }
 0x146   :  { %760 = vadd.xlane.f32.xlu0 %v759_v50 }
 0x1a9   :  { %v751_v51 = vpop.xlane.xlu0 %750 }
 0x1aa   :  { %v754_v54 = vadd.f32 %v1147_v52, %v751_v51 }
 0x1b9   :  { %v761_v53 = vpop.xlane.xlu0 %760 }
 0x1ba   :  { %v762_v55 = vadd.f32 %v1147_v52, %v761_v53 }
 0x1bc   :  { %v764_v56 = vsel %vm763_vm1, %v754_v54, %v762_v55 }
 0x1bd   :  { %766 = vst.msk [vmem:[%s1265_s4] sm:$0xff] %vm765_vm2, %v764_v56 }
 0x1be   :  { %771 = vsyncpa [#allocation3], 1 }
 0x1bf   :  { %772 = vsyncpa [#allocation5], 1 }

</bundles_post_ra>
